<compile_context>
chip_gen: v5e
topology: v5e:2x2
jax: 0.10.0
libtpu: 0.0.40
codegen_flags: <defaults>
</compile_context>

<pallas_src>
import functools

import jax
import jax.numpy as jnp
from jax import lax
from jax.experimental import pallas as pl
from jax.experimental.pallas import tpu as pltpu


def _vmem_capacity_bytes():
    try:
        return int(pltpu.get_tpu_info().vmem_capacity_bytes)
    except Exception:
        return 64 * 1024 * 1024          # conservative default: v7x per-TC VMEM


def _largest_divisor_leq(n, cap):
    cap = max(1, min(n, int(cap)))
    for d in range(cap, 0, -1):
        if n % d == 0:
            return d
    return 1


def dense_layer_forward(x, weight, bias, *, compute_dtype=jnp.bfloat16, block_b=None):
    """DenseLayer.forward: concat([x, relu(conv3x3_pad1(x))], axis=1). NCHW in/out."""
    B, Cin, H, W = x.shape
    Cout = weight.shape[0]
    Wp = W + 2                    # padded width (1 left + 1 right)
    Hp = H + 3                    # padded height (1 top + 2 bottom; extra bottom row
                                  # keeps every flat tap slice in-bounds)
    L = Hp * Wp                   # flat padded spatial length per image
    M = H * Wp                    # flat extended-output length per image
    out_dtype = x.dtype
    cdt = jnp.dtype(x.dtype if compute_dtype is None else compute_dtype)

    # ---- wrapper glue (plain JAX): pad + flatten + tap-major weight fold ----------
    xp = jnp.pad(x, ((0, 0), (0, 0), (1, 2), (1, 1))).astype(cdt).reshape(B, Cin, L)
    # torch weight (Cout, Cin, 3, 3) -> (9, Cout, Cin) with tap k = kh*3 + kw.
    wf = jnp.transpose(weight, (2, 3, 0, 1)).reshape(9, Cout, Cin).astype(cdt)
    bf = bias.reshape(Cout, 1).astype(jnp.float32)

    # ---- batch blocking: Bb images per grid step, sized from the VMEM budget ------
    esz_c = cdt.itemsize
    esz_o = jnp.dtype(out_dtype).itemsize
    per_image = (2 * Cin * L * esz_c       # double-buffered input block
                 + 2 * Cout * M * esz_o    # double-buffered output block
                 + Cin * M * esz_c         # tap-slice relayout temporary
                 + Cout * M * 4)           # f32 accumulator
    weights_bytes = 2 * (9 * Cout * Cin * esz_c + Cout * 4)
    vmem_cap = _vmem_capacity_bytes()
    budget = vmem_cap // 2
    if block_b is None:
        bb_cap = max(1, (budget - weights_bytes) // max(per_image, 1))
        Bb = _largest_divisor_leq(B, bb_cap)
    else:
        Bb = _largest_divisor_leq(B, block_b)
    step_bytes = weights_bytes + Bb * per_image
    vmem_limit = int(max(16 * 1024 * 1024, min(2 * step_bytes, vmem_cap * 3 // 4)))

    # ---- kernel: 9 accumulated per-tap MXU matmuls over the flat padded image -----
    def kernel(xp_ref, w_ref, b_ref, o_ref):
        # xp_ref: (Bb, Cin, L)    flat zero-padded images, channel-major, dtype=cdt
        # w_ref : (9, Cout, Cin)  tap-major folded weights, dtype=cdt
        # b_ref : (Cout, 1)       f32 bias
        # o_ref : (Bb, Cout, M)   relu(conv) in extended-width layout
        for b in range(Bb):                          # statically unrolled
            acc = None
            for kh in range(3):
                for kw in range(3):
                    k = kh * 3 + kw
                    off = kh * Wp + kw               # constant flat shift for this tap
                    part = jnp.dot(w_ref[k], xp_ref[b, :, off:off + M],
                                   preferred_element_type=jnp.float32)
                    acc = part if acc is None else acc + part
            o_ref[b] = jnp.maximum(acc + b_ref[...], 0.0).astype(o_ref.dtype)

    conv_ext = pl.pallas_call(
        kernel,
        out_shape=jax.ShapeDtypeStruct((B, Cout, M), out_dtype),
        grid_spec=pltpu.PrefetchScalarGridSpec(
            num_scalar_prefetch=0,
            grid=(B // Bb,),
            in_specs=[
                pl.BlockSpec((Bb, Cin, L), lambda i: (i, 0, 0)),
                pl.BlockSpec((9, Cout, Cin), lambda i: (0, 0, 0)),
                pl.BlockSpec((Cout, 1), lambda i: (0, 0)),
            ],
            out_specs=pl.BlockSpec((Bb, Cout, M), lambda i: (i, 0, 0)),
        ),
        compiler_params=pltpu.CompilerParams(
            dimension_semantics=("parallel",),      # shards batch blocks across TCs
            vmem_limit_bytes=vmem_limit,
        ),
    )(xp, wf, bf)

    # Drop the 2 garbage columns per row and concat with the ORIGINAL x
    # (bit-exact passthrough); XLA fuses the slice into the concat copy.
    conv = conv_ext.reshape(B, Cout, H, Wp)[:, :, :, :W]
    return jnp.concatenate([x, conv], axis=1)


if __name__ == "__main__":
    key = jax.random.PRNGKey(0)
    k_x, k_w, k_b = jax.random.split(key, 3)

    B, Cin, H, W = 2, 4, 16, 16
    Cout = 8

    x = jax.random.normal(k_x, (B, Cin, H, W), dtype=jnp.float32)

    # Deterministic Conv2d-style init (uniform in +-1/sqrt(fan_in)).
    fan_in = Cin * 3 * 3
    bound = 1.0 / (fan_in ** 0.5)
    weight = jax.random.uniform(k_w, (Cout, Cin, 3, 3), jnp.float32, -bound, bound)
    bias = jax.random.uniform(k_b, (Cout,), jnp.float32, -bound, bound)

    # Reference: XLA conv, same semantics as torch.nn.Conv2d(padding=1).
    ref_conv = lax.conv_general_dilated(
        x, weight, window_strides=(1, 1), padding="SAME",
        dimension_numbers=("NCHW", "OIHW", "NCHW"),
    ) + bias[None, :, None, None]
    ref = jnp.concatenate([x, jnp.maximum(ref_conv, 0.0)], axis=1)

    # f32 conv path: tight tolerance.
    fwd_f32 = jax.jit(functools.partial(dense_layer_forward, compute_dtype=jnp.float32))
    out_f32 = jax.block_until_ready(fwd_f32(x, weight, bias))
    assert out_f32.shape == (B, Cin + Cout, H, W), out_f32.shape
    assert jnp.allclose(out_f32, ref, atol=1e-5, rtol=1e-5)

    # Default bf16 conv path: passthrough is bit-exact, conv half within bf16 noise.
    fwd = jax.jit(dense_layer_forward)
    out = jax.block_until_ready(fwd(x, weight, bias))
    assert out.shape == (B, Cin + Cout, H, W), out.shape
    assert jnp.array_equal(out[:, :Cin], x)
    assert jnp.allclose(out[:, Cin:], ref[:, Cin:], atol=5e-2, rtol=5e-2)

    print("KERNEL_OK")
</pallas_src>

<mosaic_0001>
module attributes {stable_mosaic.version = 11 : i64} {
  func.func @kernel(%arg0: i32, %arg1: memref<2x4x342xf32, #tpu.memory_space<vmem>>, %arg2: memref<9x8x4xf32, #tpu.memory_space<vmem>>, %arg3: memref<8x1xf32, #tpu.memory_space<vmem>>, %arg4: memref<2x8x288xf32, #tpu.memory_space<vmem>>) attributes {dimension_semantics = [#tpu.dimension_semantics<parallel>], iteration_bounds = array<i64: 1>, scalar_prefetch = 0 : i64, scratch_operands = 0 : i64, tpu.core_type = #tpu.core_type<tc>, window_params = [{transform_indices = @transform_0, window_bounds = array<i64: 2, 4, 342>}, {pipeline_mode = #tpu.pipeline_mode<synchronous>, transform_indices = @transform_1, window_bounds = array<i64: 9, 8, 4>}, {pipeline_mode = #tpu.pipeline_mode<synchronous>, transform_indices = @transform_2, window_bounds = array<i64: 8, 1>}, {transform_indices = @transform_3, window_bounds = array<i64: 2, 8, 288>}]} {
    %c0 = arith.constant 0 : index
    %c0_0 = arith.constant 0 : index
    %c0_1 = arith.constant 0 : index
    %0 = vector.load %arg2[%c0, %c0_0, %c0_1] : memref<9x8x4xf32, #tpu.memory_space<vmem>>, vector<1x8x4xf32>
    %1 = vector.shape_cast %0 : vector<1x8x4xf32> to vector<8x4xf32>
    %c0_2 = arith.constant 0 : index
    %c0_3 = arith.constant 0 : index
    %c0_4 = arith.constant 0 : index
    %2 = vector.load %arg1[%c0_2, %c0_3, %c0_4] : memref<2x4x342xf32, #tpu.memory_space<vmem>>, vector<1x4x288xf32>
    %3 = vector.shape_cast %2 : vector<1x4x288xf32> to vector<4x288xf32>
    %cst = arith.constant dense<0.000000e+00> : vector<8x288xf32>
    %4 = tpu.matmul %1, %3, %cst {dimension_numbers = #tpu.dot_dimension_numbers<[1], [0], [0], [1], [0, 0, 1, 1], [], []>} : vector<8x4xf32>, vector<4x288xf32>, vector<8x288xf32> -> vector<8x288xf32>
    %c1 = arith.constant 1 : index
    %c0_5 = arith.constant 0 : index
    %c0_6 = arith.constant 0 : index
    %5 = vector.load %arg2[%c1, %c0_5, %c0_6] : memref<9x8x4xf32, #tpu.memory_space<vmem>>, vector<1x8x4xf32>
    %6 = vector.shape_cast %5 : vector<1x8x4xf32> to vector<8x4xf32>
    %c0_7 = arith.constant 0 : index
    %c0_8 = arith.constant 0 : index
    %c1_9 = arith.constant 1 : index
    %7 = vector.load %arg1[%c0_7, %c0_8, %c1_9] : memref<2x4x342xf32, #tpu.memory_space<vmem>>, vector<1x4x288xf32>
    %8 = vector.shape_cast %7 : vector<1x4x288xf32> to vector<4x288xf32>
    %cst_10 = arith.constant dense<0.000000e+00> : vector<8x288xf32>
    %9 = tpu.matmul %6, %8, %cst_10 {dimension_numbers = #tpu.dot_dimension_numbers<[1], [0], [0], [1], [0, 0, 1, 1], [], []>} : vector<8x4xf32>, vector<4x288xf32>, vector<8x288xf32> -> vector<8x288xf32>
    %10 = arith.addf %4, %9 : vector<8x288xf32>
    %c2 = arith.constant 2 : index
    %c0_11 = arith.constant 0 : index
    %c0_12 = arith.constant 0 : index
    %11 = vector.load %arg2[%c2, %c0_11, %c0_12] : memref<9x8x4xf32, #tpu.memory_space<vmem>>, vector<1x8x4xf32>
    %12 = vector.shape_cast %11 : vector<1x8x4xf32> to vector<8x4xf32>
    %c0_13 = arith.constant 0 : index
    %c0_14 = arith.constant 0 : index
    %c2_15 = arith.constant 2 : index
    %13 = vector.load %arg1[%c0_13, %c0_14, %c2_15] : memref<2x4x342xf32, #tpu.memory_space<vmem>>, vector<1x4x288xf32>
    %14 = vector.shape_cast %13 : vector<1x4x288xf32> to vector<4x288xf32>
    %cst_16 = arith.constant dense<0.000000e+00> : vector<8x288xf32>
    %15 = tpu.matmul %12, %14, %cst_16 {dimension_numbers = #tpu.dot_dimension_numbers<[1], [0], [0], [1], [0, 0, 1, 1], [], []>} : vector<8x4xf32>, vector<4x288xf32>, vector<8x288xf32> -> vector<8x288xf32>
    %16 = arith.addf %10, %15 : vector<8x288xf32>
    %c3 = arith.constant 3 : index
    %c0_17 = arith.constant 0 : index
    %c0_18 = arith.constant 0 : index
    %17 = vector.load %arg2[%c3, %c0_17, %c0_18] : memref<9x8x4xf32, #tpu.memory_space<vmem>>, vector<1x8x4xf32>
    %18 = vector.shape_cast %17 : vector<1x8x4xf32> to vector<8x4xf32>
    %c0_19 = arith.constant 0 : index
    %c0_20 = arith.constant 0 : index
    %c18 = arith.constant 18 : index
    %19 = vector.load %arg1[%c0_19, %c0_20, %c18] : memref<2x4x342xf32, #tpu.memory_space<vmem>>, vector<1x4x288xf32>
    %20 = vector.shape_cast %19 : vector<1x4x288xf32> to vector<4x288xf32>
    %cst_21 = arith.constant dense<0.000000e+00> : vector<8x288xf32>
    %21 = tpu.matmul %18, %20, %cst_21 {dimension_numbers = #tpu.dot_dimension_numbers<[1], [0], [0], [1], [0, 0, 1, 1], [], []>} : vector<8x4xf32>, vector<4x288xf32>, vector<8x288xf32> -> vector<8x288xf32>
    %22 = arith.addf %16, %21 : vector<8x288xf32>
    %c4 = arith.constant 4 : index
    %c0_22 = arith.constant 0 : index
    %c0_23 = arith.constant 0 : index
    %23 = vector.load %arg2[%c4, %c0_22, %c0_23] : memref<9x8x4xf32, #tpu.memory_space<vmem>>, vector<1x8x4xf32>
    %24 = vector.shape_cast %23 : vector<1x8x4xf32> to vector<8x4xf32>
    %c0_24 = arith.constant 0 : index
    %c0_25 = arith.constant 0 : index
    %c19 = arith.constant 19 : index
    %25 = vector.load %arg1[%c0_24, %c0_25, %c19] : memref<2x4x342xf32, #tpu.memory_space<vmem>>, vector<1x4x288xf32>
    %26 = vector.shape_cast %25 : vector<1x4x288xf32> to vector<4x288xf32>
    %cst_26 = arith.constant dense<0.000000e+00> : vector<8x288xf32>
    %27 = tpu.matmul %24, %26, %cst_26 {dimension_numbers = #tpu.dot_dimension_numbers<[1], [0], [0], [1], [0, 0, 1, 1], [], []>} : vector<8x4xf32>, vector<4x288xf32>, vector<8x288xf32> -> vector<8x288xf32>
    %28 = arith.addf %22, %27 : vector<8x288xf32>
    %c5 = arith.constant 5 : index
    %c0_27 = arith.constant 0 : index
    %c0_28 = arith.constant 0 : index
    %29 = vector.load %arg2[%c5, %c0_27, %c0_28] : memref<9x8x4xf32, #tpu.memory_space<vmem>>, vector<1x8x4xf32>
    %30 = vector.shape_cast %29 : vector<1x8x4xf32> to vector<8x4xf32>
    %c0_29 = arith.constant 0 : index
    %c0_30 = arith.constant 0 : index
    %c20 = arith.constant 20 : index
    %31 = vector.load %arg1[%c0_29, %c0_30, %c20] : memref<2x4x342xf32, #tpu.memory_space<vmem>>, vector<1x4x288xf32>
    %32 = vector.shape_cast %31 : vector<1x4x288xf32> to vector<4x288xf32>
    %cst_31 = arith.constant dense<0.000000e+00> : vector<8x288xf32>
    %33 = tpu.matmul %30, %32, %cst_31 {dimension_numbers = #tpu.dot_dimension_numbers<[1], [0], [0], [1], [0, 0, 1, 1], [], []>} : vector<8x4xf32>, vector<4x288xf32>, vector<8x288xf32> -> vector<8x288xf32>
    %34 = arith.addf %28, %33 : vector<8x288xf32>
    %c6 = arith.constant 6 : index
    %c0_32 = arith.constant 0 : index
    %c0_33 = arith.constant 0 : index
    %35 = vector.load %arg2[%c6, %c0_32, %c0_33] : memref<9x8x4xf32, #tpu.memory_space<vmem>>, vector<1x8x4xf32>
    %36 = vector.shape_cast %35 : vector<1x8x4xf32> to vector<8x4xf32>
    %c0_34 = arith.constant 0 : index
    %c0_35 = arith.constant 0 : index
    %c36 = arith.constant 36 : index
    %37 = vector.load %arg1[%c0_34, %c0_35, %c36] : memref<2x4x342xf32, #tpu.memory_space<vmem>>, vector<1x4x288xf32>
    %38 = vector.shape_cast %37 : vector<1x4x288xf32> to vector<4x288xf32>
    %cst_36 = arith.constant dense<0.000000e+00> : vector<8x288xf32>
    %39 = tpu.matmul %36, %38, %cst_36 {dimension_numbers = #tpu.dot_dimension_numbers<[1], [0], [0], [1], [0, 0, 1, 1], [], []>} : vector<8x4xf32>, vector<4x288xf32>, vector<8x288xf32> -> vector<8x288xf32>
    %40 = arith.addf %34, %39 : vector<8x288xf32>
    %c7 = arith.constant 7 : index
    %c0_37 = arith.constant 0 : index
    %c0_38 = arith.constant 0 : index
    %41 = vector.load %arg2[%c7, %c0_37, %c0_38] : memref<9x8x4xf32, #tpu.memory_space<vmem>>, vector<1x8x4xf32>
    %42 = vector.shape_cast %41 : vector<1x8x4xf32> to vector<8x4xf32>
    %c0_39 = arith.constant 0 : index
    %c0_40 = arith.constant 0 : index
    %c37 = arith.constant 37 : index
    %43 = vector.load %arg1[%c0_39, %c0_40, %c37] : memref<2x4x342xf32, #tpu.memory_space<vmem>>, vector<1x4x288xf32>
    %44 = vector.shape_cast %43 : vector<1x4x288xf32> to vector<4x288xf32>
    %cst_41 = arith.constant dense<0.000000e+00> : vector<8x288xf32>
    %45 = tpu.matmul %42, %44, %cst_41 {dimension_numbers = #tpu.dot_dimension_numbers<[1], [0], [0], [1], [0, 0, 1, 1], [], []>} : vector<8x4xf32>, vector<4x288xf32>, vector<8x288xf32> -> vector<8x288xf32>
    %46 = arith.addf %40, %45 : vector<8x288xf32>
    %c8 = arith.constant 8 : index
    %c0_42 = arith.constant 0 : index
    %c0_43 = arith.constant 0 : index
    %47 = vector.load %arg2[%c8, %c0_42, %c0_43] : memref<9x8x4xf32, #tpu.memory_space<vmem>>, vector<1x8x4xf32>
    %48 = vector.shape_cast %47 : vector<1x8x4xf32> to vector<8x4xf32>
    %c0_44 = arith.constant 0 : index
    %c0_45 = arith.constant 0 : index
    %c38 = arith.constant 38 : index
    %49 = vector.load %arg1[%c0_44, %c0_45, %c38] : memref<2x4x342xf32, #tpu.memory_space<vmem>>, vector<1x4x288xf32>
    %50 = vector.shape_cast %49 : vector<1x4x288xf32> to vector<4x288xf32>
    %cst_46 = arith.constant dense<0.000000e+00> : vector<8x288xf32>
    %51 = tpu.matmul %48, %50, %cst_46 {dimension_numbers = #tpu.dot_dimension_numbers<[1], [0], [0], [1], [0, 0, 1, 1], [], []>} : vector<8x4xf32>, vector<4x288xf32>, vector<8x288xf32> -> vector<8x288xf32>
    %52 = arith.addf %46, %51 : vector<8x288xf32>
    %c0_47 = arith.constant 0 : index
    %c0_48 = arith.constant 0 : index
    %53 = vector.load %arg3[%c0_47, %c0_48] : memref<8x1xf32, #tpu.memory_space<vmem>>, vector<8x1xf32>
    %54 = vector.broadcast %53 : vector<8x1xf32> to vector<8x288xf32>
    %55 = arith.addf %52, %54 : vector<8x288xf32>
    %cst_49 = arith.constant 0.000000e+00 : f32
    %56 = vector.broadcast %cst_49 : f32 to vector<8x288xf32>
    %57 = arith.maximumf %55, %56 : vector<8x288xf32>
    %c0_50 = arith.constant 0 : index
    %c0_51 = arith.constant 0 : index
    %c0_52 = arith.constant 0 : index
    %58 = vector.load %arg4[%c0_50, %c0_51, %c0_52] : memref<2x8x288xf32, #tpu.memory_space<vmem>>, vector<1x8x288xf32>
    %59 = vector.shape_cast %58 : vector<1x8x288xf32> to vector<8x288xf32>
    %60 = vector.shape_cast %57 : vector<8x288xf32> to vector<1x8x288xf32>
    tpu.vector_store %arg4[%c0_50, %c0_51, %c0_52], %60 {strides = array<i32>} : memref<2x8x288xf32, #tpu.memory_space<vmem>>, vector<1x8x288xf32>,
    %c0_53 = arith.constant 0 : index
    %c0_54 = arith.constant 0 : index
    %c0_55 = arith.constant 0 : index
    %61 = vector.load %arg2[%c0_53, %c0_54, %c0_55] : memref<9x8x4xf32, #tpu.memory_space<vmem>>, vector<1x8x4xf32>
    %62 = vector.shape_cast %61 : vector<1x8x4xf32> to vector<8x4xf32>
    %c1_56 = arith.constant 1 : index
    %c0_57 = arith.constant 0 : index
    %c0_58 = arith.constant 0 : index
    %63 = vector.load %arg1[%c1_56, %c0_57, %c0_58] : memref<2x4x342xf32, #tpu.memory_space<vmem>>, vector<1x4x288xf32>
    %64 = vector.shape_cast %63 : vector<1x4x288xf32> to vector<4x288xf32>
    %cst_59 = arith.constant dense<0.000000e+00> : vector<8x288xf32>
    %65 = tpu.matmul %62, %64, %cst_59 {dimension_numbers = #tpu.dot_dimension_numbers<[1], [0], [0], [1], [0, 0, 1, 1], [], []>} : vector<8x4xf32>, vector<4x288xf32>, vector<8x288xf32> -> vector<8x288xf32>
    %c1_60 = arith.constant 1 : index
    %c0_61 = arith.constant 0 : index
    %c0_62 = arith.constant 0 : index
    %66 = vector.load %arg2[%c1_60, %c0_61, %c0_62] : memref<9x8x4xf32, #tpu.memory_space<vmem>>, vector<1x8x4xf32>
    %67 = vector.shape_cast %66 : vector<1x8x4xf32> to vector<8x4xf32>
    %c1_63 = arith.constant 1 : index
    %c0_64 = arith.constant 0 : index
    %c1_65 = arith.constant 1 : index
    %68 = vector.load %arg1[%c1_63, %c0_64, %c1_65] : memref<2x4x342xf32, #tpu.memory_space<vmem>>, vector<1x4x288xf32>
    %69 = vector.shape_cast %68 : vector<1x4x288xf32> to vector<4x288xf32>
    %cst_66 = arith.constant dense<0.000000e+00> : vector<8x288xf32>
    %70 = tpu.matmul %67, %69, %cst_66 {dimension_numbers = #tpu.dot_dimension_numbers<[1], [0], [0], [1], [0, 0, 1, 1], [], []>} : vector<8x4xf32>, vector<4x288xf32>, vector<8x288xf32> -> vector<8x288xf32>
    %71 = arith.addf %65, %70 : vector<8x288xf32>
    %c2_67 = arith.constant 2 : index
    %c0_68 = arith.constant 0 : index
    %c0_69 = arith.constant 0 : index
    %72 = vector.load %arg2[%c2_67, %c0_68, %c0_69] : memref<9x8x4xf32, #tpu.memory_space<vmem>>, vector<1x8x4xf32>
    %73 = vector.shape_cast %72 : vector<1x8x4xf32> to vector<8x4xf32>
    %c1_70 = arith.constant 1 : index
    %c0_71 = arith.constant 0 : index
    %c2_72 = arith.constant 2 : index
    %74 = vector.load %arg1[%c1_70, %c0_71, %c2_72] : memref<2x4x342xf32, #tpu.memory_space<vmem>>, vector<1x4x288xf32>
    %75 = vector.shape_cast %74 : vector<1x4x288xf32> to vector<4x288xf32>
    %cst_73 = arith.constant dense<0.000000e+00> : vector<8x288xf32>
    %76 = tpu.matmul %73, %75, %cst_73 {dimension_numbers = #tpu.dot_dimension_numbers<[1], [0], [0], [1], [0, 0, 1, 1], [], []>} : vector<8x4xf32>, vector<4x288xf32>, vector<8x288xf32> -> vector<8x288xf32>
    %77 = arith.addf %71, %76 : vector<8x288xf32>
    %c3_74 = arith.constant 3 : index
    %c0_75 = arith.constant 0 : index
    %c0_76 = arith.constant 0 : index
    %78 = vector.load %arg2[%c3_74, %c0_75, %c0_76] : memref<9x8x4xf32, #tpu.memory_space<vmem>>, vector<1x8x4xf32>
    %79 = vector.shape_cast %78 : vector<1x8x4xf32> to vector<8x4xf32>
    %c1_77 = arith.constant 1 : index
    %c0_78 = arith.constant 0 : index
    %c18_79 = arith.constant 18 : index
    %80 = vector.load %arg1[%c1_77, %c0_78, %c18_79] : memref<2x4x342xf32, #tpu.memory_space<vmem>>, vector<1x4x288xf32>
    %81 = vector.shape_cast %80 : vector<1x4x288xf32> to vector<4x288xf32>
    %cst_80 = arith.constant dense<0.000000e+00> : vector<8x288xf32>
    %82 = tpu.matmul %79, %81, %cst_80 {dimension_numbers = #tpu.dot_dimension_numbers<[1], [0], [0], [1], [0, 0, 1, 1], [], []>} : vector<8x4xf32>, vector<4x288xf32>, vector<8x288xf32> -> vector<8x288xf32>
    %83 = arith.addf %77, %82 : vector<8x288xf32>
    %c4_81 = arith.constant 4 : index
    %c0_82 = arith.constant 0 : index
    %c0_83 = arith.constant 0 : index
    %84 = vector.load %arg2[%c4_81, %c0_82, %c0_83] : memref<9x8x4xf32, #tpu.memory_space<vmem>>, vector<1x8x4xf32>
    %85 = vector.shape_cast %84 : vector<1x8x4xf32> to vector<8x4xf32>
    %c1_84 = arith.constant 1 : index
    %c0_85 = arith.constant 0 : index
    %c19_86 = arith.constant 19 : index
    %86 = vector.load %arg1[%c1_84, %c0_85, %c19_86] : memref<2x4x342xf32, #tpu.memory_space<vmem>>, vector<1x4x288xf32>
    %87 = vector.shape_cast %86 : vector<1x4x288xf32> to vector<4x288xf32>
    %cst_87 = arith.constant dense<0.000000e+00> : vector<8x288xf32>
    %88 = tpu.matmul %85, %87, %cst_87 {dimension_numbers = #tpu.dot_dimension_numbers<[1], [0], [0], [1], [0, 0, 1, 1], [], []>} : vector<8x4xf32>, vector<4x288xf32>, vector<8x288xf32> -> vector<8x288xf32>
    %89 = arith.addf %83, %88 : vector<8x288xf32>
    %c5_88 = arith.constant 5 : index
    %c0_89 = arith.constant 0 : index
    %c0_90 = arith.constant 0 : index
    %90 = vector.load %arg2[%c5_88, %c0_89, %c0_90] : memref<9x8x4xf32, #tpu.memory_space<vmem>>, vector<1x8x4xf32>
    %91 = vector.shape_cast %90 : vector<1x8x4xf32> to vector<8x4xf32>
    %c1_91 = arith.constant 1 : index
    %c0_92 = arith.constant 0 : index
    %c20_93 = arith.constant 20 : index
    %92 = vector.load %arg1[%c1_91, %c0_92, %c20_93] : memref<2x4x342xf32, #tpu.memory_space<vmem>>, vector<1x4x288xf32>
    %93 = vector.shape_cast %92 : vector<1x4x288xf32> to vector<4x288xf32>
    %cst_94 = arith.constant dense<0.000000e+00> : vector<8x288xf32>
    %94 = tpu.matmul %91, %93, %cst_94 {dimension_numbers = #tpu.dot_dimension_numbers<[1], [0], [0], [1], [0, 0, 1, 1], [], []>} : vector<8x4xf32>, vector<4x288xf32>, vector<8x288xf32> -> vector<8x288xf32>
    %95 = arith.addf %89, %94 : vector<8x288xf32>
    %c6_95 = arith.constant 6 : index
    %c0_96 = arith.constant 0 : index
    %c0_97 = arith.constant 0 : index
    %96 = vector.load %arg2[%c6_95, %c0_96, %c0_97] : memref<9x8x4xf32, #tpu.memory_space<vmem>>, vector<1x8x4xf32>
    %97 = vector.shape_cast %96 : vector<1x8x4xf32> to vector<8x4xf32>
    %c1_98 = arith.constant 1 : index
    %c0_99 = arith.constant 0 : index
    %c36_100 = arith.constant 36 : index
    %98 = vector.load %arg1[%c1_98, %c0_99, %c36_100] : memref<2x4x342xf32, #tpu.memory_space<vmem>>, vector<1x4x288xf32>
    %99 = vector.shape_cast %98 : vector<1x4x288xf32> to vector<4x288xf32>
    %cst_101 = arith.constant dense<0.000000e+00> : vector<8x288xf32>
    %100 = tpu.matmul %97, %99, %cst_101 {dimension_numbers = #tpu.dot_dimension_numbers<[1], [0], [0], [1], [0, 0, 1, 1], [], []>} : vector<8x4xf32>, vector<4x288xf32>, vector<8x288xf32> -> vector<8x288xf32>
    %101 = arith.addf %95, %100 : vector<8x288xf32>
    %c7_102 = arith.constant 7 : index
    %c0_103 = arith.constant 0 : index
    %c0_104 = arith.constant 0 : index
    %102 = vector.load %arg2[%c7_102, %c0_103, %c0_104] : memref<9x8x4xf32, #tpu.memory_space<vmem>>, vector<1x8x4xf32>
    %103 = vector.shape_cast %102 : vector<1x8x4xf32> to vector<8x4xf32>
    %c1_105 = arith.constant 1 : index
    %c0_106 = arith.constant 0 : index
    %c37_107 = arith.constant 37 : index
    %104 = vector.load %arg1[%c1_105, %c0_106, %c37_107] : memref<2x4x342xf32, #tpu.memory_space<vmem>>, vector<1x4x288xf32>
    %105 = vector.shape_cast %104 : vector<1x4x288xf32> to vector<4x288xf32>
    %cst_108 = arith.constant dense<0.000000e+00> : vector<8x288xf32>
    %106 = tpu.matmul %103, %105, %cst_108 {dimension_numbers = #tpu.dot_dimension_numbers<[1], [0], [0], [1], [0, 0, 1, 1], [], []>} : vector<8x4xf32>, vector<4x288xf32>, vector<8x288xf32> -> vector<8x288xf32>
    %107 = arith.addf %101, %106 : vector<8x288xf32>
    %c8_109 = arith.constant 8 : index
    %c0_110 = arith.constant 0 : index
    %c0_111 = arith.constant 0 : index
    %108 = vector.load %arg2[%c8_109, %c0_110, %c0_111] : memref<9x8x4xf32, #tpu.memory_space<vmem>>, vector<1x8x4xf32>
    %109 = vector.shape_cast %108 : vector<1x8x4xf32> to vector<8x4xf32>
    %c1_112 = arith.constant 1 : index
    %c0_113 = arith.constant 0 : index
    %c38_114 = arith.constant 38 : index
    %110 = vector.load %arg1[%c1_112, %c0_113, %c38_114] : memref<2x4x342xf32, #tpu.memory_space<vmem>>, vector<1x4x288xf32>
    %111 = vector.shape_cast %110 : vector<1x4x288xf32> to vector<4x288xf32>
    %cst_115 = arith.constant dense<0.000000e+00> : vector<8x288xf32>
    %112 = tpu.matmul %109, %111, %cst_115 {dimension_numbers = #tpu.dot_dimension_numbers<[1], [0], [0], [1], [0, 0, 1, 1], [], []>} : vector<8x4xf32>, vector<4x288xf32>, vector<8x288xf32> -> vector<8x288xf32>
    %113 = arith.addf %107, %112 : vector<8x288xf32>
    %c0_116 = arith.constant 0 : index
    %c0_117 = arith.constant 0 : index
    %114 = vector.load %arg3[%c0_116, %c0_117] : memref<8x1xf32, #tpu.memory_space<vmem>>, vector<8x1xf32>
    %115 = vector.broadcast %114 : vector<8x1xf32> to vector<8x288xf32>
    %116 = arith.addf %113, %115 : vector<8x288xf32>
    %cst_118 = arith.constant 0.000000e+00 : f32
    %117 = vector.broadcast %cst_118 : f32 to vector<8x288xf32>
    %118 = arith.maximumf %116, %117 : vector<8x288xf32>
    %c1_119 = arith.constant 1 : index
    %c0_120 = arith.constant 0 : index
    %c0_121 = arith.constant 0 : index
    %119 = vector.load %arg4[%c1_119, %c0_120, %c0_121] : memref<2x8x288xf32, #tpu.memory_space<vmem>>, vector<1x8x288xf32>
    %120 = vector.shape_cast %119 : vector<1x8x288xf32> to vector<8x288xf32>
    %121 = vector.shape_cast %118 : vector<8x288xf32> to vector<1x8x288xf32>
    tpu.vector_store %arg4[%c1_119, %c0_120, %c0_121], %121 {strides = array<i32>} : memref<2x8x288xf32, #tpu.memory_space<vmem>>, vector<1x8x288xf32>,
    return
  }
  func.func @transform_0(%arg0: i32) -> (i32, i32, i32) {
    %c0_i32 = arith.constant 0 : i32
    %c0_i32_0 = arith.constant 0 : i32
    %c0_i32_1 = arith.constant 0 : i32
    return %arg0, %c0_i32, %c0_i32_0 : i32, i32, i32
  }
  func.func @transform_1(%arg0: i32) -> (i32, i32, i32) {
    %c0_i32 = arith.constant 0 : i32
    %c0_i32_0 = arith.constant 0 : i32
    %c0_i32_1 = arith.constant 0 : i32
    %c0_i32_2 = arith.constant 0 : i32
    return %c0_i32, %c0_i32_0, %c0_i32_1 : i32, i32, i32
  }
  func.func @transform_2(%arg0: i32) -> (i32, i32) {
    %c0_i32 = arith.constant 0 : i32
    %c0_i32_0 = arith.constant 0 : i32
    %c0_i32_1 = arith.constant 0 : i32
    return %c0_i32, %c0_i32_0 : i32, i32
  }
  func.func @transform_3(%arg0: i32) -> (i32, i32, i32) {
    %c0_i32 = arith.constant 0 : i32
    %c0_i32_0 = arith.constant 0 : i32
    %c0_i32_1 = arith.constant 0 : i32
    return %arg0, %c0_i32, %c0_i32_0 : i32, i32, i32
  }
}

</mosaic_0001>

<bundles_post_ra>
// kernel: dense_layer_forward.1
= control target key start
LH: loop header
LB: loop body
LE: loop exit
PB: predicated region body
PF: predicated region fallthrough
CT: control target
= control target key end

     0   :  { %s1825_s16 = smov 127   ;;  %s1826_s21 = smov 126   ;;  %vm40_vm0 = vcmask 1043456   ;;  %vm36_vm1 = vcmask 31744   ;;  %vm200_vm2 = vcmask 1031168   ;;  %vm33_vm3 = vcmask 1039360   ;;  %s2258_s0 = inlined_call_operand.vmem [shape: f32[2,4,342], index: 0, kind: input, shape index: {}]   ;;  %s2259_s1 = inlined_call_operand.vmem [shape: f32[9,8,4], index: 1, kind: input, shape index: {}]   ;;  %s2260_s2 = inlined_call_operand.vmem [shape: f32[8,1], index: 2, kind: input, shape index: {}]   ;;  %s2261_s3 = inlined_call_operand.vmem [shape: f32[2,8,288], index: 3, kind: output, shape index: {}]  }
   0x1   :  { %v16_v0 = vld [vmem:[%s2258_s0 + $0x8] sm:$0xf]  ;;  %v1860_v1 = vld [vmem:[%s2258_s0] sm:$0xff]  ;;  %s1827_s24 = smov 110   ;;  %s1828_s27 = smov 109   ;;  %v1924_v34 = vld [vmem:[%s2258_s0 + $0xc] sm:$0xff] }
   0x2   :  { %23 = vst [vmem:[#allocation1 + $0x10] ss:$2 sm:$0xff] %v16_v0  ;;  %v185_v5 = vld [vmem:[%s2258_s0 + $0x8] sm:$0xf]  ;;  %s1829_s30 = smov 108   ;;  %s1830_s6 = smov 92  }
   0x3   :  { %21 = vst [vmem:[#allocation1] ss:$2 sm:$0xff] %v1860_v1  ;;  %v278_v9 = vld [vmem:[%s2258_s0 + $0x8] sm:$0xf]  ;;  %s1831_s9 = smov 91   ;;  %s1832_s14 = smov 90  }
   0x4   :  { %v371_v13 = vld [vmem:[%s2258_s0 + $0x8] sm:$0xf]  ;;  %v1734_v33 = vld [vmem:[%s2258_s0 + $0x14] sm:$0xf]  ;;  %v1964_v53 = vld [vmem:[%s2259_s1] sm:$0xff]  ;;  %vm293_vm4 = vcmask 900096  }
   0x5   :  { %v464_v17 = vld [vmem:[%s2258_s0 + $0x8] sm:$0xf]  ;;  %v1750_v41 = vld [vmem:[%s2258_s0 + $0x14] sm:$0xf]  ;;  %vm386_vm5 = vcmask 891904   ;;  %vm479_vm6 = vcmask 883712  }
   0x6   :  { %v557_v21 = vld [vmem:[%s2258_s0 + $0x8] sm:$0xf]  ;;  %v1759_v45 = vld [vmem:[%s2258_s0 + $0x14] sm:$0xf]  ;;  %vm572_vm7 = vcmask 752640   ;;  %vm665_vm8 = vcmask 744448  }
   0x7   :  { %v650_v25 = vld [vmem:[%s2258_s0 + $0x8] sm:$0xf]  ;;  %v1768_v49 = vld [vmem:[%s2258_s0 + $0x14] sm:$0xf]  ;;  %vm758_vm9 = vcmask 736256   ;;  %vm847_vm10 = vcmask 261120  }
   0x8   :  { %v743_v29 = vld [vmem:[%s2258_s0 + $0x8] sm:$0xf]  ;;  %v1777_v54 = vld [vmem:[%s2258_s0 + $0x14] sm:$0xf] }
   0x9   :  { %v26_v2 = vld.sshfl [vmem:[#allocation1 + $0x10] sm:$0xff pattern:$0x75316420] }
   0xa   :  { %31 = vrot.lane.b32.xlu1 %v26_v2, %s1825_s16  ;;  %109 = vst [vmem:[#allocation1 + $0x10] ss:$2 sm:$0xff] %v16_v0  ;;  %v24_v3 = vld.sshfl [vmem:[#allocation1] sm:$0xff pattern:$0x75316420] }
   0xb   :  { %27 = vrot.lane.b32.xlu0 %v24_v3, %s1825_s16  ;;  %v25_v4 = vld.sshfl [vmem:[#allocation1 + $0x8] sm:$0xff pattern:$0x75316420]  ;;  %v1786_v59 = vld [vmem:[%s2258_s0 + $0x14] sm:$0xf] }
   0xc   :  { %107 = vst [vmem:[#allocation1] ss:$2 sm:$0xff] %v1860_v1  ;;  %v1993_v3 = vld [vmem:[%s2259_s1 + $0x10] sm:$0xff] }
  0x11   :  { %v1869_v6 = vld.sshfl [vmem:[#allocation1 + $0x10] sm:$0xff pattern:$0x75316420] }
  0x12   :  { %190 = vst [vmem:[#allocation1 + $0x10] ss:$2 sm:$0xff] %v185_v5 }
  0x13   :  { %29 = vrot.lane.b32.xlu0 %v25_v4, %s1825_s16  ;;  %v1872_v7 = vld.sshfl [vmem:[#allocation1] sm:$0xff pattern:$0x75316420]  ;;  %v1874_v8 = vld.sshfl [vmem:[#allocation1 + $0x8] sm:$0xff pattern:$0x75316420] }
  0x14   :  { %188 = vst [vmem:[#allocation1] ss:$2 sm:$0xff] %v1860_v1  ;;  %1678 = vmatpush.msk.msra.mxu3 %vm40_vm0, %v1872_v7  ;;  %v1795_v4 = vld [vmem:[%s2258_s0 + $0x14] sm:$0xf] }
  0x15   :  { %1679 = vmatmul.msk.f32.vlgmr.msra.gmra.mxu3 %vm36_vm1, %v1964_v53 }
  0x19   :  { %v193_v10 = vld.sshfl [vmem:[#allocation1 + $0x10] sm:$0xff pattern:$0x75316420] }
  0x1a   :  { %283 = vst [vmem:[#allocation1 + $0x10] ss:$2 sm:$0xff] %v278_v9 }
  0x1b   :  { %v191_v11 = vld.sshfl [vmem:[#allocation1] sm:$0xff pattern:$0x75316420]  ;;  %v192_v12 = vld.sshfl [vmem:[#allocation1 + $0x8] sm:$0xff pattern:$0x75316420] }
  0x1c   :  { %194 = vrot.lane.b32.xlu1 %v191_v11, %s1826_s21  ;;  %281 = vst [vmem:[#allocation1] ss:$2 sm:$0xff] %v1860_v1  ;;  %196 = vrot.lane.b32.xlu2 %v192_v12, %s1826_s21 }
  0x21   :  { %v286_v14 = vld.sshfl [vmem:[#allocation1 + $0x10] sm:$0xff pattern:$0x75316420] }
  0x22   :  { %376 = vst [vmem:[#allocation1 + $0x10] ss:$2 sm:$0xff] %v371_v13 }
  0x23   :  { %v285_v15 = vld.sshfl [vmem:[#allocation1 + $0x8] sm:$0xff pattern:$0x75316420]  ;;  %v284_v16 = vld.sshfl [vmem:[#allocation1] sm:$0xff pattern:$0x75316420] }
  0x24   :  { %289 = vrot.lane.b32.xlu1 %v285_v15, %s1827_s24  ;;  %287 = vrot.lane.b32.xlu0 %v284_v16, %s1827_s24  ;;  %374 = vst [vmem:[#allocation1] ss:$2 sm:$0xff] %v1860_v1  ;;  %v1804_v15 = vld [vmem:[%s2258_s0 + $0x14] sm:$0xf]  ;;  %v2020_v16 = vld [vmem:[%s2259_s1 + $0x18] sm:$0xff] }
  0x25   :  { %198 = vrot.lane.b32.xlu2 %v193_v10, %s1826_s21 }
  0x29   :  { %v379_v18 = vld.sshfl [vmem:[#allocation1 + $0x10] sm:$0xff pattern:$0x75316420] }
  0x2a   :  { %469 = vst [vmem:[#allocation1 + $0x10] ss:$2 sm:$0xff] %v464_v17 }
  0x2b   :  { %v378_v19 = vld.sshfl [vmem:[#allocation1 + $0x8] sm:$0xff pattern:$0x75316420]  ;;  %v377_v20 = vld.sshfl [vmem:[#allocation1] sm:$0xff pattern:$0x75316420] }
  0x2c   :  { %382 = vrot.lane.b32.xlu1 %v378_v19, %s1828_s27  ;;  %380 = vrot.lane.b32.xlu0 %v377_v20, %s1828_s27  ;;  %467 = vst [vmem:[#allocation1] ss:$2 sm:$0xff] %v1860_v1 }
  0x2d   :  { %291 = vrot.lane.b32.xlu2 %v286_v14, %s1827_s24 }
  0x31   :  { %v472_v22 = vld.sshfl [vmem:[#allocation1 + $0x10] sm:$0xff pattern:$0x75316420] }
  0x32   :  { %562 = vst [vmem:[#allocation1 + $0x10] ss:$2 sm:$0xff] %v557_v21 }
  0x33   :  { %v471_v23 = vld.sshfl [vmem:[#allocation1 + $0x8] sm:$0xff pattern:$0x75316420]  ;;  %v470_v24 = vld.sshfl [vmem:[#allocation1] sm:$0xff pattern:$0x75316420] }
  0x34   :  { %475 = vrot.lane.b32.xlu1 %v471_v23, %s1829_s30  ;;  %473 = vrot.lane.b32.xlu0 %v470_v24, %s1829_s30  ;;  %560 = vst [vmem:[#allocation1] ss:$2 sm:$0xff] %v1860_v1 }
  0x35   :  { %384 = vrot.lane.b32.xlu2 %v379_v18, %s1828_s27 }
  0x39   :  { %v565_v26 = vld.sshfl [vmem:[#allocation1 + $0x10] sm:$0xff pattern:$0x75316420] }
  0x3a   :  { %655 = vst [vmem:[#allocation1 + $0x10] ss:$2 sm:$0xff] %v650_v25 }
  0x3b   :  { %v564_v27 = vld.sshfl [vmem:[#allocation1 + $0x8] sm:$0xff pattern:$0x75316420]  ;;  %v563_v28 = vld.sshfl [vmem:[#allocation1] sm:$0xff pattern:$0x75316420] }
  0x3c   :  { %568 = vrot.lane.b32.xlu1 %v564_v27, %s1830_s6  ;;  %566 = vrot.lane.b32.xlu0 %v563_v28, %s1830_s6  ;;  %653 = vst [vmem:[#allocation1] ss:$2 sm:$0xff] %v1860_v1 }
  0x3d   :  { %477 = vrot.lane.b32.xlu2 %v472_v22, %s1829_s30 }
  0x41   :  { %v658_v30 = vld.sshfl [vmem:[#allocation1 + $0x10] sm:$0xff pattern:$0x75316420] }
  0x42   :  { %748 = vst [vmem:[#allocation1 + $0x10] ss:$2 sm:$0xff] %v743_v29 }
  0x43   :  { %v657_v31 = vld.sshfl [vmem:[#allocation1 + $0x8] sm:$0xff pattern:$0x75316420]  ;;  %v656_v32 = vld.sshfl [vmem:[#allocation1] sm:$0xff pattern:$0x75316420] }
  0x44   :  { %661 = vrot.lane.b32.xlu1 %v657_v31, %s1831_s9  ;;  %659 = vrot.lane.b32.xlu0 %v656_v32, %s1831_s9  ;;  %746 = vst [vmem:[#allocation1] ss:$2 sm:$0xff] %v1860_v1  ;;  %v1985_v1 = vld [vmem:[%s2259_s1 + $0x8] sm:$0xff]  ;;  %v2059_v31 = vld [vmem:[%s2259_s1 + $0x20] sm:$0xff] }
  0x45   :  { %570 = vrot.lane.b32.xlu2 %v565_v26, %s1830_s6 }
  0x49   :  { %v751_v35 = vld.sshfl [vmem:[#allocation1 + $0x10] sm:$0xff pattern:$0x75316420] }
  0x4a   :  { %858 = vst [vmem:[#allocation1 + $0x10] ss:$2 sm:$0xff] %v1734_v33 }
  0x4b   :  { %v750_v36 = vld.sshfl [vmem:[#allocation1 + $0x8] sm:$0xff pattern:$0x75316420]  ;;  %v749_v37 = vld.sshfl [vmem:[#allocation1] sm:$0xff pattern:$0x75316420] }
  0x4c   :  { %754 = vrot.lane.b32.xlu1 %v750_v36, %s1832_s14  ;;  %752 = vrot.lane.b32.xlu0 %v749_v37, %s1832_s14  ;;  %856 = vst [vmem:[#allocation1] ss:$2 sm:$0xff] %v1924_v34 }
  0x4d   :  { %663 = vrot.lane.b32.xlu2 %v658_v30, %s1831_s9 }
  0x51   :  { %v861_v38 = vld.sshfl [vmem:[#allocation1 + $0x10] sm:$0xff pattern:$0x75316420] }
  0x52   :  { %941 = vst [vmem:[#allocation1 + $0x10] ss:$2 sm:$0xff] %v1734_v33 }
  0x53   :  { %v860_v39 = vld.sshfl [vmem:[#allocation1 + $0x8] sm:$0xff pattern:$0x75316420]  ;;  %v859_v40 = vld.sshfl [vmem:[#allocation1] sm:$0xff pattern:$0x75316420] }
  0x54   :  { %864 = vrot.lane.b32.xlu1 %v860_v39, %s1825_s16  ;;  %862 = vrot.lane.b32.xlu0 %v859_v40, %s1825_s16  ;;  %939 = vst [vmem:[#allocation1] ss:$2 sm:$0xff] %v1924_v34 }
  0x55   :  { %756 = vrot.lane.b32.xlu2 %v751_v35, %s1832_s14  ;;  %v1833_v35 = vmov 0  }
  0x56   :  { %1823 = vset.pattern.permute.xlu0 %v1833_v35  ;;  %1824 = vset.pattern.permute.xlu1 %v1833_v35 }
  0x59   :  { %v1937_v42 = vld.sshfl [vmem:[#allocation1 + $0x10] sm:$0xff pattern:$0x75316420] }
  0x5a   :  { %1021 = vst [vmem:[#allocation1 + $0x10] ss:$2 sm:$0xff] %v1750_v41 }
  0x5b   :  { %v1939_v43 = vld.sshfl [vmem:[#allocation1] sm:$0xff pattern:$0x75316420]  ;;  %v1941_v44 = vld.sshfl [vmem:[#allocation1 + $0x8] sm:$0xff pattern:$0x75316420] }
  0x5c   :  { %1019 = vst [vmem:[#allocation1] ss:$2 sm:$0xff] %v1924_v34 }
  0x5d   :  { %866 = vrot.lane.b32.xlu2 %v861_v38, %s1825_s16  ;;  %v2075_v38 = vld [vmem:[%s2259_s1 + $0x28] sm:$0xff] }
  0x61   :  { %v1024_v46 = vld.sshfl [vmem:[#allocation1 + $0x10] sm:$0xff pattern:$0x75316420] }
  0x62   :  { %1112 = vst [vmem:[#allocation1 + $0x10] ss:$2 sm:$0xff] %v1759_v45  ;;  %v833_v45 = vld [vmem:[%s2260_s2] sm:$0xff] }
  0x63   :  { %v1023_v47 = vld.sshfl [vmem:[#allocation1 + $0x8] sm:$0xff pattern:$0x75316420]  ;;  %v1022_v48 = vld.sshfl [vmem:[#allocation1] sm:$0xff pattern:$0x75316420] }
  0x64   :  { %1027 = vrot.lane.b32.xlu1 %v1023_v47, %s1826_s21  ;;  %1025 = vrot.lane.b32.xlu0 %v1022_v48, %s1826_s21  ;;  %1110 = vst [vmem:[#allocation1] ss:$2 sm:$0xff] %v1924_v34  ;;  %v2094_v48 = vld [vmem:[%s2259_s1 + $0x30] sm:$0xff] }
  0x65   :  { %1029 = vrot.lane.b32.xlu2 %v1024_v46, %s1826_s21 }
  0x69   :  { %v1115_v50 = vld.sshfl [vmem:[#allocation1 + $0x10] sm:$0xff pattern:$0x75316420] }
  0x6a   :  { %1203 = vst [vmem:[#allocation1 + $0x10] ss:$2 sm:$0xff] %v1768_v49 }
  0x6b   :  { %v1114_v51 = vld.sshfl [vmem:[#allocation1 + $0x8] sm:$0xff pattern:$0x75316420]  ;;  %v1113_v52 = vld.sshfl [vmem:[#allocation1] sm:$0xff pattern:$0x75316420] }
  0x6c   :  { %1118 = vrot.lane.b32.xlu1 %v1114_v51, %s1827_s24  ;;  %1116 = vrot.lane.b32.xlu0 %v1113_v52, %s1827_s24  ;;  %1201 = vst [vmem:[#allocation1] ss:$2 sm:$0xff] %v1924_v34 }
  0x6d   :  { %1120 = vrot.lane.b32.xlu2 %v1115_v50, %s1827_s24 }
  0x71   :  { %v1206_v55 = vld.sshfl [vmem:[#allocation1 + $0x10] sm:$0xff pattern:$0x75316420] }
  0x72   :  { %1294 = vst [vmem:[#allocation1 + $0x10] ss:$2 sm:$0xff] %v1777_v54 }
  0x73   :  { %v1205_v56 = vld.sshfl [vmem:[#allocation1 + $0x8] sm:$0xff pattern:$0x75316420]  ;;  %v1204_v57 = vld.sshfl [vmem:[#allocation1] sm:$0xff pattern:$0x75316420] }
  0x74   :  { %1209 = vrot.lane.b32.xlu1 %v1205_v56, %s1828_s27  ;;  %1207 = vrot.lane.b32.xlu0 %v1204_v57, %s1828_s27  ;;  %1292 = vst [vmem:[#allocation1] ss:$2 sm:$0xff] %v1924_v34 }
  0x75   :  { %1211 = vrot.lane.b32.xlu2 %v1206_v55, %s1828_s27  ;;  %v2110_v55 = vld [vmem:[%s2259_s1 + $0x38] sm:$0xff] }
  0x76   :  { %v197_v58 = vpop.permute.xlu2 %196 }
  0x79   :  { %v1297_v60 = vld.sshfl [vmem:[#allocation1 + $0x10] sm:$0xff pattern:$0x75316420] }
  0x7a   :  { %1385 = vst [vmem:[#allocation1 + $0x10] ss:$2 sm:$0xff] %v1786_v59 }
  0x7b   :  { %v1296_v61 = vld.sshfl [vmem:[#allocation1 + $0x8] sm:$0xff pattern:$0x75316420]  ;;  %v1295_v62 = vld.sshfl [vmem:[#allocation1] sm:$0xff pattern:$0x75316420] }
  0x7c   :  { %1300 = vrot.lane.b32.xlu1 %v1296_v61, %s1829_s30  ;;  %1298 = vrot.lane.b32.xlu0 %v1295_v62, %s1829_s30  ;;  %1383 = vst [vmem:[#allocation1] ss:$2 sm:$0xff] %v1924_v34  ;;  %v32_v63 = vpop.permute.xlu1 %31  ;;  %v2128_v61 = vld [vmem:[%s2259_s1 + $0x40] sm:$0xff] }
  0x7d   :  { %v28_v0 = vpop.permute.xlu0 %27  ;;  %1676 = vmatpush.msk.msra.mxu2 %vm40_vm0, %v32_v63  ;;  %1302 = vrot.lane.b32.xlu2 %v1297_v60, %s1829_s30 }
  0x7e   :  { %1677 = vmatmul.msk.f32.vlgmr.msra.gmra.mxu2 %vm36_vm1, %v1985_v1 }
  0x7f   :  { %v199_v2 = vpop.permute.xlu2 %198 }
  0x80   :  { %v202_v5 = vsel %vm200_vm2, %v197_v58, %v199_v2 }
  0x81   :  { %1687 = vmatpush.msk.msrb.mxu3 %vm40_vm0, %v202_v5  ;;  %v1388_v7 = vld.sshfl [vmem:[#allocation1 + $0x10] sm:$0xff pattern:$0x75316420] }
  0x82   :  { %1688 = vmatmul.msk.f32.vlgmr.msrb.gmra.mxu3 %vm36_vm1, %v1993_v3  ;;  %1476 = vst [vmem:[#allocation1 + $0x10] ss:$2 sm:$0xff] %v1795_v4 }
  0x83   :  { %v1387_v9 = vld.sshfl [vmem:[#allocation1 + $0x8] sm:$0xff pattern:$0x75316420]  ;;  %v1386_v10 = vld.sshfl [vmem:[#allocation1] sm:$0xff pattern:$0x75316420] }
  0x84   :  { %1391 = vrot.lane.b32.xlu1 %v1387_v9, %s1830_s6  ;;  %1389 = vrot.lane.b32.xlu0 %v1386_v10, %s1830_s6  ;;  %1474 = vst [vmem:[#allocation1] ss:$2 sm:$0xff] %v1924_v34 }
  0x85   :  { %v30_v11 = vpop.permute.xlu0 %29  ;;  %1393 = vrot.lane.b32.xlu2 %v1388_v7, %s1830_s6 }
  0x86   :  { %v34_v12 = vsel %vm33_vm3, %v28_v0, %v30_v11  ;;  %v35_v13 = vsel %vm33_vm3, %v30_v11, %v32_v63 }
  0x87   :  { %1672 = vmatpush.msk.msra.mxu0 %vm40_vm0, %v34_v12  ;;  %1674 = vmatpush.msk.msra.mxu1 %vm40_vm0, %v35_v13  ;;  %v292_v14 = vpop.permute.xlu2 %291 }
  0x88   :  { %1673 = vmatmul.msk.f32.vlgmr.msra.gmra.mxu0 %vm36_vm1, %v1985_v1  ;;  %1675 = vmatmul.msk.f32.vlgmr.msra.gmra.mxu1 %vm36_vm1, %v1985_v1 }
  0x89   :  { %1680 = vmatpush.msk.msrb.mxu0 %vm40_vm0, %v1874_v8  ;;  %1682 = vmatpush.msk.msrb.mxu1 %vm40_vm0, %v1869_v6  ;;  %v1479_v17 = vld.sshfl [vmem:[#allocation1 + $0x10] sm:$0xff pattern:$0x75316420] }
  0x8a   :  { %1696 = vmatpush.msk.msra.mxu3 %vm40_vm0, %v292_v14  ;;  %1567 = vst [vmem:[#allocation1 + $0x10] ss:$2 sm:$0xff] %v1804_v15 }
  0x8b   :  { %1689 = vmatpush.msk.msra.mxu0 %vm40_vm0, %v199_v2  ;;  %v1478_v18 = vld.sshfl [vmem:[#allocation1 + $0x8] sm:$0xff pattern:$0x75316420]  ;;  %v1477_v19 = vld.sshfl [vmem:[#allocation1] sm:$0xff pattern:$0x75316420]  ;;  %1697 = vmatmul.msk.f32.vlgmr.msra.gmra.mxu3 %vm36_vm1, %v2020_v16 }
  0x8c   :  { %1482 = vrot.lane.b32.xlu1 %v1478_v18, %s1831_s9  ;;  %1480 = vrot.lane.b32.xlu0 %v1477_v19, %s1831_s9  ;;  %1565 = vst [vmem:[#allocation1] ss:$2 sm:$0xff] %v1924_v34 }
  0x8d   :  { %1484 = vrot.lane.b32.xlu2 %v1479_v17, %s1831_s9 }
  0x8e   :  { %v195_v6 = vpop.permute.xlu1 %194 }
  0x8f   :  { %v201_v8 = vsel %vm200_vm2, %v195_v6, %v197_v58  ;;  %v385_v20 = vpop.permute.xlu2 %384 }
  0x90   :  { %1685 = vmatpush.msk.msrb.mxu2 %vm40_vm0, %v201_v8  ;;  %1681 = vmatmul.msk.f32.vlgmr.msrb.gmra.mxu0 %vm36_vm1, %v1964_v53 }
  0x91   :  { %1683 = vmatmul.msk.f32.vlgmr.msrb.gmra.mxu1 %vm36_vm1, %v1964_v53  ;;  %1686 = vmatmul.msk.f32.vlgmr.msrb.gmra.mxu2 %vm36_vm1, %v1993_v3  ;;  %v1570_v21 = vld.sshfl [vmem:[#allocation1 + $0x10] sm:$0xff pattern:$0x75316420] }
  0x93   :  { %v1569_v22 = vld.sshfl [vmem:[#allocation1 + $0x8] sm:$0xff pattern:$0x75316420]  ;;  %v1568_v23 = vld.sshfl [vmem:[#allocation1] sm:$0xff pattern:$0x75316420] }
  0x94   :  { %1573 = vrot.lane.b32.xlu1 %v1569_v22, %s1832_s14  ;;  %1571 = vrot.lane.b32.xlu0 %v1568_v23, %s1832_s14 }
  0x95   :  { %1575 = vrot.lane.b32.xlu2 %v1570_v21, %s1832_s14 }
  0x96   :  { %v290_v24 = vpop.permute.xlu1 %289  ;;  %v288_v25 = vpop.permute.xlu0 %287 }
  0x97   :  { %v295_v26 = vsel %vm293_vm4, %v290_v24, %v292_v14  ;;  %v294_v27 = vsel %vm293_vm4, %v288_v25, %v290_v24  ;;  %v478_v28 = vpop.permute.xlu2 %477 }
  0x98   :  { %1692 = vmatpush.msk.msra.mxu1 %vm40_vm0, %v294_v27  ;;  %1694 = vmatpush.msk.msra.mxu2 %vm40_vm0, %v295_v26 }
  0x99   :  { %1690 = vmatmul.msk.f32.vlgmr.msra.gmra.mxu0 %vm36_vm1, %v1993_v3  ;;  %1693 = vmatmul.msk.f32.vlgmr.msra.gmra.mxu1 %vm36_vm1, %v2020_v16 }
  0x9a   :  { %1695 = vmatmul.msk.f32.vlgmr.msra.gmra.mxu2 %vm36_vm1, %v2020_v16 }
  0x9b   :  { %1703 = vmatpush.msk.msrb.mxu2 %vm40_vm0, %v385_v20 }
  0x9c   :  { %836 = vperm.xlu0 %1823, %v833_v45   ;;  %1654 = vperm.xlu1 %1824, %v833_v45  }
  0x9e   :  { %v383_v29 = vpop.permute.xlu1 %382  ;;  %v381_v30 = vpop.permute.xlu0 %380 }
  0x9f   :  { %v388_v32 = vsel %vm386_vm5, %v383_v29, %v385_v20  ;;  %v387_v33 = vsel %vm386_vm5, %v381_v30, %v383_v29  ;;  %v571_v34 = vpop.permute.xlu2 %570 }
  0xa0   :  { %1699 = vmatpush.msk.msrb.mxu0 %vm40_vm0, %v387_v33  ;;  %1701 = vmatpush.msk.msrb.mxu1 %vm40_vm0, %v388_v32 }
  0xa1   :  { %1700 = vmatmul.msk.f32.vlgmr.msrb.gmra.mxu0 %vm36_vm1, %v2059_v31  ;;  %1702 = vmatmul.msk.f32.vlgmr.msrb.gmra.mxu1 %vm36_vm1, %v2059_v31 }
  0xa2   :  { %1704 = vmatmul.msk.f32.vlgmr.msrb.gmra.mxu2 %vm36_vm1, %v2059_v31  ;;  %1710 = vmatpush.msk.msra.mxu1 %vm40_vm0, %v478_v28 }
  0xa6   :  { %v476_v36 = vpop.permute.xlu1 %475  ;;  %v474_v37 = vpop.permute.xlu0 %473 }
  0xa7   :  { %v481_v39 = vsel %vm479_vm6, %v476_v36, %v478_v28  ;;  %v480_v40 = vsel %vm479_vm6, %v474_v37, %v476_v36  ;;  %v664_v41 = vpop.permute.xlu2 %663 }
  0xa8   :  { %1706 = vmatpush.msk.msrb.mxu3 %vm40_vm0, %v480_v40  ;;  %1708 = vmatpush.msk.msra.mxu0 %vm40_vm0, %v481_v39  ;;  %v139_v40 = vpop.f32.mrf.mxu3 }
  0xa9   :  { %1707 = vmatmul.msk.f32.vlgmr.msrb.gmra.mxu3 %vm36_vm1, %v2075_v38  ;;  %1709 = vmatmul.msk.f32.vlgmr.msra.gmra.mxu0 %vm36_vm1, %v2075_v38 }
  0xaa   :  { %1711 = vmatmul.msk.f32.vlgmr.msra.gmra.mxu1 %vm36_vm1, %v2075_v38  ;;  %1717 = vmatpush.msk.msrb.mxu0 %vm40_vm0, %v571_v34 }
  0xae   :  { %v569_v46 = vpop.permute.xlu1 %568  ;;  %v567_v47 = vpop.permute.xlu0 %566 }
  0xaf   :  { %v574_v49 = vsel %vm572_vm7, %v569_v46, %v571_v34  ;;  %v573_v50 = vsel %vm572_vm7, %v567_v47, %v569_v46  ;;  %v757_v51 = vpop.permute.xlu2 %756 }
  0xb0   :  { %1713 = vmatpush.msk.msra.mxu2 %vm40_vm0, %v573_v50  ;;  %1715 = vmatpush.msk.msra.mxu3 %vm40_vm0, %v574_v49 }
  0xb1   :  { %1714 = vmatmul.msk.f32.vlgmr.msra.gmra.mxu2 %vm36_vm1, %v2094_v48  ;;  %1716 = vmatmul.msk.f32.vlgmr.msra.gmra.mxu3 %vm36_vm1, %v2094_v48 }
  0xb2   :  { %1718 = vmatmul.msk.f32.vlgmr.msrb.gmra.mxu0 %vm36_vm1, %v2094_v48  ;;  %1724 = vmatpush.msk.msrb.mxu3 %vm40_vm0, %v664_v41 }
  0xb6   :  { %v662_v52 = vpop.permute.xlu1 %661  ;;  %v660_v54 = vpop.permute.xlu0 %659 }
  0xb7   :  { %v667_v56 = vsel %vm665_vm8, %v662_v52, %v664_v41  ;;  %v666_v57 = vsel %vm665_vm8, %v660_v54, %v662_v52  ;;  %v867_v58 = vpop.permute.xlu2 %866 }
  0xb8   :  { %1720 = vmatpush.msk.msrb.mxu1 %vm40_vm0, %v666_v57  ;;  %1722 = vmatpush.msk.msrb.mxu2 %vm40_vm0, %v667_v56 }
  0xb9   :  { %1721 = vmatmul.msk.f32.vlgmr.msrb.gmra.mxu1 %vm36_vm1, %v2110_v55  ;;  %1723 = vmatmul.msk.f32.vlgmr.msrb.gmra.mxu2 %vm36_vm1, %v2110_v55 }
  0xba   :  { %1725 = vmatmul.msk.f32.vlgmr.msrb.gmra.mxu3 %vm36_vm1, %v2110_v55  ;;  %1731 = vmatpush.msk.msra.mxu2 %vm40_vm0, %v757_v51 }
  0xbc   :  { %1742 = vmatpush.msk.msrb.mxu2 %vm40_vm0, %v1939_v43 }
  0xbe   :  { %v755_v59 = vpop.permute.xlu1 %754  ;;  %v753_v60 = vpop.permute.xlu0 %752 }
  0xbf   :  { %v760_v62 = vsel %vm758_vm9, %v755_v59, %v757_v51  ;;  %v759_v63 = vsel %vm758_vm9, %v753_v60, %v755_v59  ;;  %v1030_v43 = vpop.permute.xlu2 %1029 }
  0xc0   :  { %1727 = vmatpush.msk.msra.mxu0 %vm40_vm0, %v759_v63  ;;  %1729 = vmatpush.msk.msra.mxu1 %vm40_vm0, %v760_v62 }
  0xc1   :  { %1728 = vmatmul.msk.f32.vlgmr.msra.gmra.mxu0 %vm36_vm1, %v2128_v61  ;;  %1730 = vmatmul.msk.f32.vlgmr.msra.gmra.mxu1 %vm36_vm1, %v2128_v61 }
  0xc2   :  { %1732 = vmatmul.msk.f32.vlgmr.msra.gmra.mxu2 %vm36_vm1, %v2128_v61  ;;  %1740 = vmatpush.msk.msrb.mxu1 %vm40_vm0, %v867_v58 }
  0xc6   :  { %v865_v0 = vpop.permute.xlu1 %864  ;;  %v863_v2 = vpop.permute.xlu0 %862 }
  0xc7   :  { %v869_v4 = vsel %vm33_vm3, %v865_v0, %v867_v58  ;;  %v868_v5 = vsel %vm33_vm3, %v863_v2, %v865_v0  ;;  %v1121_v7 = vpop.permute.xlu2 %1120 }
  0xc8   :  { %1736 = vmatpush.msk.msra.mxu3 %vm40_vm0, %v868_v5  ;;  %1738 = vmatpush.msk.msrb.mxu0 %vm40_vm0, %v869_v4 }
  0xc9   :  { %1737 = vmatmul.msk.f32.vlgmr.msra.gmra.mxu3 %vm36_vm1, %v1985_v1  ;;  %1739 = vmatmul.msk.f32.vlgmr.msrb.gmra.mxu0 %vm36_vm1, %v1985_v1 }
  0xca   :  { %1741 = vmatmul.msk.f32.vlgmr.msrb.gmra.mxu1 %vm36_vm1, %v1985_v1  ;;  %1743 = vmatmul.msk.f32.vlgmr.msrb.gmra.mxu2 %vm36_vm1, %v1964_v53 }
  0xcb   :  { %1744 = vmatpush.msk.msrb.mxu3 %vm40_vm0, %v1941_v44  ;;  %1746 = vmatpush.msk.msra.mxu0 %vm40_vm0, %v1937_v42 }
  0xcd   :  { %1755 = vmatpush.msk.msra.mxu3 %vm40_vm0, %v1030_v43 }
  0xcf   :  { %v1212_v12 = vpop.permute.xlu2 %1211 }
  0xd1   :  { %1745 = vmatmul.msk.f32.vlgmr.msrb.gmra.mxu3 %vm36_vm1, %v1964_v53  ;;  %1747 = vmatmul.msk.f32.vlgmr.msra.gmra.mxu0 %vm36_vm1, %v1964_v53 }
  0xd6   :  { %v1028_v9 = vpop.permute.xlu1 %1027  ;;  %v1026_v1 = vpop.permute.xlu0 %1025 }
  0xd7   :  { %v1032_v10 = vsel %vm200_vm2, %v1028_v9, %v1030_v43  ;;  %v1031_v11 = vsel %vm200_vm2, %v1026_v1, %v1028_v9  ;;  %v1303_v14 = vpop.permute.xlu2 %1302 }
  0xd8   :  { %1751 = vmatpush.msk.msra.mxu1 %vm40_vm0, %v1031_v11  ;;  %1753 = vmatpush.msk.msra.mxu2 %vm40_vm0, %v1032_v10 }
  0xd9   :  { %1752 = vmatmul.msk.f32.vlgmr.msra.gmra.mxu1 %vm36_vm1, %v1993_v3  ;;  %1754 = vmatmul.msk.f32.vlgmr.msra.gmra.mxu2 %vm36_vm1, %v1993_v3 }
  0xda   :  { %1756 = vmatmul.msk.f32.vlgmr.msra.gmra.mxu3 %vm36_vm1, %v1993_v3  ;;  %1764 = vmatpush.msk.msrb.mxu2 %vm40_vm0, %v1121_v7 }
  0xde   :  { %v1119_v42 = vpop.permute.xlu1 %1118  ;;  %v1117_v44 = vpop.permute.xlu0 %1116 }
  0xdf   :  { %v1123_v53 = vsel %vm293_vm4, %v1119_v42, %v1121_v7  ;;  %v1122_v13 = vsel %vm293_vm4, %v1117_v44, %v1119_v42 }
  0xe0   :  { %1760 = vmatpush.msk.msrb.mxu0 %vm40_vm0, %v1122_v13  ;;  %1762 = vmatpush.msk.msrb.mxu1 %vm40_vm0, %v1123_v53 }
  0xe1   :  { %1761 = vmatmul.msk.f32.vlgmr.msrb.gmra.mxu0 %vm36_vm1, %v2020_v16  ;;  %1763 = vmatmul.msk.f32.vlgmr.msrb.gmra.mxu1 %vm36_vm1, %v2020_v16 }
  0xe2   :  { %1765 = vmatmul.msk.f32.vlgmr.msrb.gmra.mxu2 %vm36_vm1, %v2020_v16  ;;  %1773 = vmatpush.msk.msra.mxu1 %vm40_vm0, %v1212_v12  ;;  %v1394_v16 = vpop.permute.xlu2 %1393 }
  0xe6   :  { %v1210_v3 = vpop.permute.xlu1 %1209  ;;  %v1208_v15 = vpop.permute.xlu0 %1207 }
  0xe7   :  { %v1214_v17 = vsel %vm386_vm5, %v1210_v3, %v1212_v12  ;;  %v1213_v18 = vsel %vm386_vm5, %v1208_v15, %v1210_v3 }
  0xe8   :  { %1769 = vmatpush.msk.msrb.mxu3 %vm40_vm0, %v1213_v18  ;;  %1771 = vmatpush.msk.msra.mxu0 %vm40_vm0, %v1214_v17 }
  0xe9   :  { %1770 = vmatmul.msk.f32.vlgmr.msrb.gmra.mxu3 %vm36_vm1, %v2059_v31  ;;  %1772 = vmatmul.msk.f32.vlgmr.msra.gmra.mxu0 %vm36_vm1, %v2059_v31 }
  0xea   :  { %1774 = vmatmul.msk.f32.vlgmr.msra.gmra.mxu1 %vm36_vm1, %v2059_v31  ;;  %1782 = vmatpush.msk.msrb.mxu0 %vm40_vm0, %v1303_v14  ;;  %v1485_v21 = vpop.permute.xlu2 %1484 }
  0xee   :  { %v1301_v19 = vpop.permute.xlu1 %1300  ;;  %v1299_v6 = vpop.permute.xlu0 %1298 }
  0xef   :  { %v1305_v8 = vsel %vm479_vm6, %v1301_v19, %v1303_v14  ;;  %v1304_v20 = vsel %vm479_vm6, %v1299_v6, %v1301_v19 }
  0xf0   :  { %1778 = vmatpush.msk.msra.mxu2 %vm40_vm0, %v1304_v20  ;;  %1780 = vmatpush.msk.msra.mxu3 %vm40_vm0, %v1305_v8 }
  0xf1   :  { %1779 = vmatmul.msk.f32.vlgmr.msra.gmra.mxu2 %vm36_vm1, %v2075_v38  ;;  %1781 = vmatmul.msk.f32.vlgmr.msra.gmra.mxu3 %vm36_vm1, %v2075_v38 }
  0xf2   :  { %1783 = vmatmul.msk.f32.vlgmr.msrb.gmra.mxu0 %vm36_vm1, %v2075_v38  ;;  %1791 = vmatpush.msk.msrb.mxu3 %vm40_vm0, %v1394_v16  ;;  %v1576_v30 = vpop.permute.xlu2 %1575 }
  0xf6   :  { %v1392_v22 = vpop.permute.xlu1 %1391  ;;  %v1390_v23 = vpop.permute.xlu0 %1389 }
  0xf7   :  { %v1396_v24 = vsel %vm572_vm7, %v1392_v22, %v1394_v16  ;;  %v1395_v25 = vsel %vm572_vm7, %v1390_v23, %v1392_v22 }
  0xf8   :  { %1787 = vmatpush.msk.msrb.mxu1 %vm40_vm0, %v1395_v25  ;;  %1789 = vmatpush.msk.msrb.mxu2 %vm40_vm0, %v1396_v24 }
  0xf9   :  { %1788 = vmatmul.msk.f32.vlgmr.msrb.gmra.mxu1 %vm36_vm1, %v2094_v48  ;;  %1790 = vmatmul.msk.f32.vlgmr.msrb.gmra.mxu2 %vm36_vm1, %v2094_v48 }
  0xfa   :  { %1792 = vmatmul.msk.f32.vlgmr.msrb.gmra.mxu3 %vm36_vm1, %v2094_v48  ;;  %1800 = vmatpush.msk.msra.mxu2 %vm40_vm0, %v1485_v21 }
  0xfe   :  { %v1483_v26 = vpop.permute.xlu1 %1482  ;;  %v1481_v27 = vpop.permute.xlu0 %1480 }
  0xff   :  { %v1487_v28 = vsel %vm665_vm8, %v1483_v26, %v1485_v21  ;;  %v1486_v29 = vsel %vm665_vm8, %v1481_v27, %v1483_v26 }
 0x100   :  { %1796 = vmatpush.msk.msra.mxu0 %vm40_vm0, %v1486_v29  ;;  %1798 = vmatpush.msk.msra.mxu1 %vm40_vm0, %v1487_v28 }
 0x101   :  { %1797 = vmatmul.msk.f32.vlgmr.msra.gmra.mxu0 %vm36_vm1, %v2110_v55  ;;  %1799 = vmatmul.msk.f32.vlgmr.msra.gmra.mxu1 %vm36_vm1, %v2110_v55  ;;  %v104_v37 = vpop.f32.mrf.mxu2 }
 0x102   :  { %1801 = vmatmul.msk.f32.vlgmr.msra.gmra.mxu2 %vm36_vm1, %v2110_v55  ;;  %1809 = vmatpush.msk.msrb.mxu1 %vm40_vm0, %v1576_v30 }
 0x105   :  { %v64_v31 = vpop.f32.mrf.mxu0  ;;  %v84_v32 = vpop.f32.mrf.mxu1 }
 0x106   :  { %v1574_v33 = vpop.permute.xlu1 %1573  ;;  %v1572_v34 = vpop.permute.xlu0 %1571  ;;  %v140_v52 = vadd.f32 %v139_v40, %v64_v31 }
 0x107   :  { %v1578_v35 = vsel %vm758_vm9, %v1574_v33, %v1576_v30  ;;  %v1577_v36 = vsel %vm758_vm9, %v1572_v34, %v1574_v33  ;;  %v249_v47 = vpop.f32.mrf.mxu3 }
 0x108   :  { %1805 = vmatpush.msk.msra.mxu3 %vm40_vm0, %v1577_v36  ;;  %1807 = vmatpush.msk.msrb.mxu0 %vm40_vm0, %v1578_v35 }
 0x109   :  { %1806 = vmatmul.msk.f32.vlgmr.msra.gmra.mxu3 %vm36_vm1, %v2128_v61  ;;  %1808 = vmatmul.msk.f32.vlgmr.msrb.gmra.mxu0 %vm36_vm1, %v2128_v61 }
 0x10a   :  { %1810 = vmatmul.msk.f32.vlgmr.msrb.gmra.mxu1 %vm36_vm1, %v2128_v61 }
 0x10d   :  { %v159_v38 = vpop.f32.mrf.mxu0 }
 0x10e   :  { %v179_v39 = vpop.f32.mrf.mxu1  ;;  %v160_v54 = vadd.f32 %v159_v38, %v84_v32  ;;  %v837_v3 = vpop.permute.xlu0 %836 }
 0x10f   :  { %v362_v51 = vpop.f32.mrf.mxu3  ;;  %v180_v61 = vadd.f32 %v179_v39, %v104_v37 }
 0x110   :  { %v273_v59 = vadd.f32 %v249_v47, %v160_v54 }
 0x114   :  { %v229_v41 = vpop.f32.mrf.mxu2 }
 0x115   :  { %v272_v56 = vadd.f32 %v229_v41, %v140_v52 }
 0x116   :  { %v269_v45 = vpop.f32.mrf.mxu0  ;;  %v322_v46 = vpop.f32.mrf.mxu1 }
 0x117   :  { %v365_v62 = vadd.f32 %v322_v46, %v272_v56  ;;  %v274_v43 = vadd.f32 %v269_v45, %v180_v61 }
 0x119   :  { %v367_v5 = vadd.f32 %v362_v51, %v274_v43 }
 0x11d   :  { %v342_v48 = vpop.f32.mrf.mxu2 }
 0x11e   :  { %v415_v49 = vpop.f32.mrf.mxu0  ;;  %v435_v50 = vpop.f32.mrf.mxu1  ;;  %v366_v63 = vadd.f32 %v342_v48, %v273_v59 }
 0x11f   :  { %v458_v0 = vadd.f32 %v415_v49, %v365_v62 }
 0x120   :  { %v459_v4 = vadd.f32 %v435_v50, %v366_v63 }
 0x125   :  { %v455_v55 = vpop.f32.mrf.mxu2 }
 0x126   :  { %v528_v57 = vpop.f32.mrf.mxu0  ;;  %v460_v42 = vadd.f32 %v455_v55, %v367_v5 }
 0x127   :  { %v548_v58 = vpop.f32.mrf.mxu1  ;;  %v552_v11 = vadd.f32 %v528_v57, %v459_v4 }
 0x128   :  { %v553_v15 = vadd.f32 %v548_v58, %v460_v42 }
 0x12c   :  { %v508_v60 = vpop.f32.mrf.mxu3 }
 0x12d   :  { %v551_v1 = vadd.f32 %v508_v60, %v458_v0 }
 0x12f   :  { %v641_v7 = vpop.f32.mrf.mxu0 }
 0x130   :  { %v646_v21 = vadd.f32 %v641_v7, %v553_v15 }
 0x134   :  { %v601_v2 = vpop.f32.mrf.mxu2  ;;  %v621_v10 = vpop.f32.mrf.mxu3 }
 0x135   :  { %v644_v12 = vadd.f32 %v601_v2, %v551_v1  ;;  %v645_v44 = vadd.f32 %v621_v10, %v552_v11 }
 0x136   :  { %v694_v9 = vpop.f32.mrf.mxu1 }
 0x137   :  { %v737_v13 = vadd.f32 %v694_v9, %v644_v12 }
 0x13c   :  { %v714_v53 = vpop.f32.mrf.mxu2 }
 0x13d   :  { %v738_v14 = vadd.f32 %v714_v53, %v645_v44  ;;  %v734_v6 = vpop.f32.mrf.mxu3  ;;  %v1655_v53 = vpop.permute.xlu1 %1654 }
 0x13e   :  { %v787_v17 = vpop.f32.mrf.mxu0  ;;  %v807_v18 = vpop.f32.mrf.mxu1  ;;  %v739_v24 = vadd.f32 %v734_v6, %v646_v21 }
 0x13f   :  { %v830_v16 = vadd.f32 %v787_v17, %v737_v13  ;;  %v831_v19 = vadd.f32 %v807_v18, %v738_v14 }
 0x141   :  { %v839_v8 = vadd.f32 %v837_v3, %v830_v16  ;;  %v840_v20 = vadd.f32 %v837_v3, %v831_v19 }
 0x143   :  { %v842_v22 = vmax.f32 %v839_v8, 0.0  ;;  %v843_v23 = vmax.f32 %v840_v20, 0.0 }
 0x145   :  { %845 = vst [vmem:[%s2261_s3] sm:$0xff] %v842_v22  ;;  %v827_v25 = vpop.f32.mrf.mxu2 }
 0x146   :  { %846 = vst [vmem:[%s2261_s3 + $0x8] sm:$0xff] %v843_v23  ;;  %v832_v26 = vadd.f32 %v827_v25, %v739_v24  ;;  %v916_v29 = vpop.f32.mrf.mxu0 }
 0x147   :  { %v936_v30 = vpop.f32.mrf.mxu1 }
 0x148   :  { %v841_v27 = vadd.f32 %v837_v3, %v832_v26 }
 0x14a   :  { %v844_v28 = vmax.f32 %v841_v27, 0.0 }
 0x14c   :  { %848 = vst.msk [vmem:[%s2261_s3 + $0x10] sm:$0xff] %vm847_vm10, %v844_v28  ;;  %v896_v31 = vpop.f32.mrf.mxu3 }
 0x14d   :  { %v971_v33 = vpop.f32.mrf.mxu2 }
 0x14e   :  { %v1011_v32 = vpop.f32.mrf.mxu0  ;;  %v972_v55 = vadd.f32 %v971_v33, %v896_v31 }
 0x14f   :  { %v1012_v49 = vadd.f32 %v1011_v32, %v936_v30 }
 0x154   :  { %v991_v35 = vpop.f32.mrf.mxu3 }
 0x155   :  { %v992_v47 = vadd.f32 %v991_v35, %v916_v29 }
 0x156   :  { %v1059_v34 = vpop.f32.mrf.mxu1 }
 0x157   :  { %v1102_v60 = vadd.f32 %v1059_v34, %v972_v55 }
 0x15c   :  { %v1079_v37 = vpop.f32.mrf.mxu2 }
 0x15d   :  { %v1099_v39 = vpop.f32.mrf.mxu3  ;;  %v1103_v52 = vadd.f32 %v1079_v37, %v992_v47 }
 0x15e   :  { %v1150_v36 = vpop.f32.mrf.mxu0  ;;  %v1170_v38 = vpop.f32.mrf.mxu1  ;;  %v1104_v56 = vadd.f32 %v1099_v39, %v1012_v49 }
 0x15f   :  { %v1194_v57 = vadd.f32 %v1170_v38, %v1103_v52  ;;  %v1193_v2 = vadd.f32 %v1150_v36, %v1102_v60 }
 0x165   :  { %v1190_v41 = vpop.f32.mrf.mxu2 }
 0x166   :  { %v1261_v40 = vpop.f32.mrf.mxu0  ;;  %v1195_v58 = vadd.f32 %v1190_v41, %v1104_v56 }
 0x167   :  { %v1281_v46 = vpop.f32.mrf.mxu1  ;;  %v1285_v61 = vadd.f32 %v1261_v40, %v1194_v57 }
 0x168   :  { %v1286_v0 = vadd.f32 %v1281_v46, %v1195_v58 }
 0x16c   :  { %v1241_v45 = vpop.f32.mrf.mxu3 }
 0x16d   :  { %v1284_v9 = vadd.f32 %v1241_v45, %v1193_v2 }
 0x16f   :  { %v1372_v50 = vpop.f32.mrf.mxu0 }
 0x170   :  { %v1377_v7 = vadd.f32 %v1372_v50, %v1286_v0 }
 0x174   :  { %v1332_v48 = vpop.f32.mrf.mxu2  ;;  %v1352_v54 = vpop.f32.mrf.mxu3 }
 0x175   :  { %v1376_v43 = vadd.f32 %v1352_v54, %v1285_v61  ;;  %v1375_v10 = vadd.f32 %v1332_v48, %v1284_v9 }
 0x176   :  { %v1423_v51 = vpop.f32.mrf.mxu1 }
 0x177   :  { %v1466_v15 = vadd.f32 %v1423_v51, %v1375_v10 }
 0x17c   :  { %v1443_v59 = vpop.f32.mrf.mxu2 }
 0x17d   :  { %v1467_v4 = vadd.f32 %v1443_v59, %v1376_v43  ;;  %v1463_v5 = vpop.f32.mrf.mxu3 }
 0x17e   :  { %v1514_v62 = vpop.f32.mrf.mxu0  ;;  %v1534_v63 = vpop.f32.mrf.mxu1  ;;  %v1468_v1 = vadd.f32 %v1463_v5, %v1377_v7 }
 0x17f   :  { %v1558_v11 = vadd.f32 %v1534_v63, %v1467_v4  ;;  %v1557_v16 = vadd.f32 %v1514_v62, %v1466_v15 }
 0x185   :  { %v1554_v12 = vpop.f32.mrf.mxu2 }
 0x186   :  { %v1559_v42 = vadd.f32 %v1554_v12, %v1468_v1  ;;  %v1625_v44 = vpop.f32.mrf.mxu0 }
 0x187   :  { %v1649_v13 = vadd.f32 %v1625_v44, %v1558_v11  ;;  %v1645_v14 = vpop.f32.mrf.mxu1 }
 0x188   :  { %v1650_v3 = vadd.f32 %v1645_v14, %v1559_v42 }
 0x189   :  { %v1658_v17 = vadd.f32 %v1655_v53, %v1649_v13 }
 0x18a   :  { %v1659_v18 = vadd.f32 %v1655_v53, %v1650_v3 }
 0x18b   :  { %v1661_v19 = vmax.f32 %v1658_v17, 0.0 }
 0x18c   :  { %v1662_v6 = vmax.f32 %v1659_v18, 0.0  ;;  %v1605_v8 = vpop.f32.mrf.mxu3 }
 0x18d   :  { %1812 = vst [vmem:[%s2261_s3 + $0x20] sm:$0xff] %v1661_v19  ;;  %v1648_v20 = vadd.f32 %v1605_v8, %v1557_v16 }
 0x18e   :  { %1813 = vst.msk [vmem:[%s2261_s3 + $0x28] sm:$0xff] %vm847_vm10, %v1662_v6 }
 0x18f   :  { %v1657_v21 = vadd.f32 %v1655_v53, %v1648_v20 }
 0x191   :  { %v1660_v22 = vmax.f32 %v1657_v21, 0.0 }
 0x193   :  { %1811 = vst [vmem:[%s2261_s3 + $0x18] sm:$0xff] %v1660_v22 }

</bundles_post_ra>
